<compile_context>
chip_gen: v7x
topology: tpu7x:2x2x1
jax: 0.10.0
libtpu: 0.0.40
codegen_flags: <defaults>
</compile_context>

<pallas_src>
import jax
import jax.numpy as jnp
from jax.experimental import pallas as pl
from jax.experimental.pallas import tpu as pltpu


# ----------------------------------------------------------------------------
# Kernel A: encoder + latent + decoder hidden layers (everything except the
# big (H, N) output matmul).  grid=() -- one step, all operands in VMEM.
# ----------------------------------------------------------------------------
def _encoder_latent_kernel(
    x_ref,                 # (B, E)  f32 user embeddings
    w1_ref, b1_ref,        # (E, H) bf16, (1, H) f32
    w2_ref, b2_ref,        # (H, H) bf16, (1, H) f32
    wmu_ref, bmu_ref,      # (H, E) bf16, (1, E) f32
    wlv_ref, blv_ref,      # (H, E) bf16, (1, E) f32
    eps_ref,               # (B, E)  f32 N(0,1) noise
    dw1_ref, db1_ref,      # (E, H) bf16, (1, H) f32
    dw2_ref, db2_ref,      # (H, H) bf16, (1, H) f32
    d_ref,                 # out: (B, H)   bf16 decoder hidden activation
    mulv_ref,              # out: (B, 2E)  f32 lane-dense slab [mu | logvar]
):
    bf16 = jnp.bfloat16
    f32 = jnp.float32
    E = eps_ref.shape[-1]

    x = x_ref[...].astype(bf16)

    # ---- encoder ----
    h = jnp.dot(x, w1_ref[...], preferred_element_type=f32) + b1_ref[...]
    h = jnp.maximum(h, 0.0).astype(bf16)
    h = jnp.dot(h, w2_ref[...], preferred_element_type=f32) + b2_ref[...]
    h = jnp.maximum(h, 0.0).astype(bf16)

    # ---- latent (mu / logvar / reparameterize), kept in f32 ----
    mu = jnp.dot(h, wmu_ref[...], preferred_element_type=f32) + bmu_ref[...]
    logvar = jnp.dot(h, wlv_ref[...], preferred_element_type=f32) + blv_ref[...]
    std = jnp.exp(0.5 * logvar)
    z = (mu + eps_ref[...] * std).astype(bf16)

    # ---- decoder hidden layers ----
    d = jnp.dot(z, dw1_ref[...], preferred_element_type=f32) + db1_ref[...]
    d = jnp.maximum(d, 0.0).astype(bf16)
    d = jnp.dot(d, dw2_ref[...], preferred_element_type=f32) + db2_ref[...]
    d = jnp.maximum(d, 0.0)

    d_ref[...] = d.astype(d_ref.dtype)
    # lane-dense (B, 2E) output slab: mu in lanes [0, E), logvar in [E, 2E)
    mulv_ref[:, 0:E] = mu
    mulv_ref[:, E:2 * E] = logvar


# ----------------------------------------------------------------------------
# Kernel B: decoder output layer, tiled over the item dimension N.
# HBM-bandwidth bound on the dw3 stream; all compute hides under the DMA.
# ----------------------------------------------------------------------------
def _decoder_out_kernel(d_ref, dw3_ref, db3_ref, out_ref):
    logits = jnp.dot(d_ref[...], dw3_ref[...], preferred_element_type=jnp.float32)
    logits = logits + db3_ref[...]
    # Exact sigmoid: exp/divide are fully hidden under the dw3 DMA, so
    # exactness is free and probabilities stay strictly inside [0, 1].
    out_ref[...] = (1.0 / (1.0 + jnp.exp(-logits))).astype(out_ref.dtype)


# ----------------------------------------------------------------------------
# Wrappers
# ----------------------------------------------------------------------------
def _full_vmem_spec(shape):
    # Whole array resident in VMEM (grid=() -> index_map takes no args).
    # `shape` is bound per call, so no late-binding pitfall.
    return pl.BlockSpec(shape, lambda: (0,) * len(shape))


def _round_up(x, m):
    return int(pl.cdiv(x, m) * m)


def _vmem_capacity_bytes():
    """Physical VMEM of the current chip, with a conservative fallback."""
    try:
        cap = getattr(pltpu.get_tpu_info(), "vmem_capacity_bytes", None)
        if cap:
            return int(cap)
    except Exception:
        pass
    return 64 * 1024 * 1024  # v7x per-TensorCore size; safe lower bound


def _choose_tile_n(n_items, target=8192):
    """Lane-aligned tile over the item axis.

    * >= 2 (and an even number of) grid steps whenever the layer is big enough,
      so dimension_semantics=("parallel",) feeds both v7x TensorCores.
    * each step streams a large dw3 tile (default target ~8192 lanes, i.e.
      ~2 MiB at H=128) so the ~0.35 us per-grid-step overhead is amortized on
      v5e / v6e / v7x alike.
    """
    if n_items <= 128:
        return 128
    steps = max(2, 2 * int(pl.cdiv(n_items, 2 * target)))
    tile = _round_up(pl.cdiv(n_items, steps), 128)
    return min(tile, _round_up(n_items, 128))


def recvae_forward(user_emb, params, eps, *, tile_n=None):
    """user_emb: (B, E) f32; eps: (B, E) f32; params: dict of weights."""
    B, E = user_emb.shape
    H = params["w1"].shape[1]
    N = params["db3"].shape[1]

    # ---- kernel A: encoder / latent / decoder hidden ----
    a_args = (
        user_emb,
        params["w1"], params["b1"],
        params["w2"], params["b2"],
        params["wmu"], params["bmu"],
        params["wlv"], params["blv"],
        eps,
        params["dw1"], params["db1"],
        params["dw2"], params["db2"],
    )
    d, mulv = pl.pallas_call(
        _encoder_latent_kernel,
        grid=(),
        in_specs=[_full_vmem_spec(a.shape) for a in a_args],
        out_specs=(
            _full_vmem_spec((B, H)),
            _full_vmem_spec((B, 2 * E)),
        ),
        out_shape=(
            jax.ShapeDtypeStruct((B, H), jnp.bfloat16),
            jax.ShapeDtypeStruct((B, 2 * E), jnp.float32),
        ),
    )(*a_args)
    mu = mulv[:, :E]
    logvar = mulv[:, E:]

    # ---- kernel B: tiled (H, N) output matmul + sigmoid ----
    if tile_n is None:
        tile_n = _choose_tile_n(N)
    tile_n = min(_round_up(tile_n, 128), _round_up(N, 128))
    # No padding of dw3/db3 here (that would re-copy the dominant tensor every
    # call under jit): Pallas masks the ragged last block itself.
    grid = (int(pl.cdiv(N, tile_n)),)

    # VMEM budget: double-buffered dw3/db3/out tiles + resident d + headroom,
    # capped at 60% of the chip's physical VMEM (v7x only has 64 MiB per core).
    w_bytes = params["dw3"].dtype.itemsize
    per_step = H * tile_n * w_bytes + tile_n * 4 + B * tile_n * 2
    need = 2 * per_step + 2 * B * H * 2 + (2 << 20)
    vmem_limit = int(min(max(need, 8 << 20), 0.6 * _vmem_capacity_bytes()))

    out = pl.pallas_call(
        _decoder_out_kernel,
        grid=grid,
        in_specs=[
            pl.BlockSpec((B, H), lambda j: (0, 0)),
            pl.BlockSpec((H, tile_n), lambda j: (0, j)),
            pl.BlockSpec((1, tile_n), lambda j: (0, j)),
        ],
        out_specs=pl.BlockSpec((B, tile_n), lambda j: (0, j)),
        out_shape=jax.ShapeDtypeStruct((B, N), jnp.bfloat16),
        compiler_params=pltpu.CompilerParams(
            dimension_semantics=("parallel",),
            vmem_limit_bytes=vmem_limit,
        ),
    )(d, params["dw3"], params["db3"])

    return out, mu, logvar


def init_params(key, num_items, embedding_dim, hidden_dim):
    """Deterministic synthetic parameters (shapes match the PyTorch module).

    Matmul weights are stored in bf16 (MXU-native, half the DMA bytes);
    biases stay f32 so bias-add / ReLU / latent math run in f32 everywhere.
    """
    ks = jax.random.split(key, 14)
    s = 0.05

    def w(k, shape, dtype):
        return (s * jax.random.normal(k, shape)).astype(dtype)

    E, H, N = embedding_dim, hidden_dim, num_items
    bf16, f32 = jnp.bfloat16, jnp.float32
    return {
        "w1": w(ks[0], (E, H), bf16),   "b1": w(ks[1], (1, H), f32),
        "w2": w(ks[2], (H, H), bf16),   "b2": w(ks[3], (1, H), f32),
        "wmu": w(ks[4], (H, E), bf16),  "bmu": w(ks[5], (1, E), f32),
        "wlv": w(ks[6], (H, E), bf16),  "blv": w(ks[7], (1, E), f32),
        "dw1": w(ks[8], (E, H), bf16),  "db1": w(ks[9], (1, H), f32),
        "dw2": w(ks[10], (H, H), bf16), "db2": w(ks[11], (1, H), f32),
        "dw3": w(ks[12], (H, N), bf16), "db3": w(ks[13], (1, N), f32),
    }


def reference_forward(user_emb, params, eps):
    """Plain-JAX mirror of the kernel math (bf16 matmuls, f32 accumulation)."""
    bf16, f32 = jnp.bfloat16, jnp.float32

    def dot(a, w):
        return jnp.dot(a.astype(bf16), w, preferred_element_type=f32)

    h = jnp.maximum(dot(user_emb, params["w1"]) + params["b1"], 0.0)
    h = jnp.maximum(dot(h, params["w2"]) + params["b2"], 0.0)
    mu = dot(h, params["wmu"]) + params["bmu"]
    logvar = dot(h, params["wlv"]) + params["blv"]
    z = mu + eps * jnp.exp(0.5 * logvar)
    d = jnp.maximum(dot(z, params["dw1"]) + params["db1"], 0.0)
    d = jnp.maximum(dot(d, params["dw2"]) + params["db2"], 0.0)
    logits = dot(d, params["dw3"]) + params["db3"]
    return jax.nn.sigmoid(logits), mu, logvar


if __name__ == "__main__":
    num_users = 32
    num_items = 500          # not a tile multiple -> exercises the ragged last block
    embedding_dim = 64
    hidden_dim = 128
    batch = 16               # multiple of 8 sublanes; grow toward 128+ in prod

    key = jax.random.PRNGKey(0)
    k_emb, k_par, k_usr, k_eps = jax.random.split(key, 4)

    # nn.Embedding table and parameters (deterministic synthetic init)
    emb_table = (0.05 * jax.random.normal(
        k_emb, (num_users, embedding_dim))).astype(jnp.float32)
    params = init_params(k_par, num_items, embedding_dim, hidden_dim)

    # input user ids and reparameterization noise (torch.randn_like analogue)
    user = jax.random.randint(k_usr, (batch,), 0, num_users)
    eps = jax.random.normal(k_eps, (batch, embedding_dim), dtype=jnp.float32)

    # Embedding gather kept as plain-JAX glue.
    # TODO(synk): fuse the gather into kernel A via PrefetchScalarGridSpec once B grows.
    user_emb = jnp.take(emb_table, user, axis=0)

    fwd = jax.jit(recvae_forward)   # tile_n chosen automatically from N
    output, mu, logvar = fwd(user_emb, params, eps)
    jax.block_until_ready((output, mu, logvar))

    # shape / sanity checks
    assert output.shape == (batch, num_items)
    assert mu.shape == (batch, embedding_dim)
    assert logvar.shape == (batch, embedding_dim)
    assert bool(jnp.all(jnp.isfinite(output)))
    # exact sigmoid + bf16 round-to-nearest keeps probabilities in [0, 1]
    assert bool(jnp.all((output >= 0.0) & (output <= 1.0)))

    # numerical check against a plain-JAX reference of the same math
    ref_out, ref_mu, ref_lv = reference_forward(user_emb, params, eps)
    assert bool(jnp.allclose(output.astype(jnp.float32), ref_out,
                             atol=1e-2, rtol=1e-2))
    assert bool(jnp.allclose(mu, ref_mu, atol=1e-2, rtol=1e-2))
    assert bool(jnp.allclose(logvar, ref_lv, atol=1e-2, rtol=1e-2))

    print("KERNEL_OK")
</pallas_src>

<mosaic_0001>
module attributes {stable_mosaic.version = 11 : i64} {
  func.func @_encoder_latent_kernel(%arg0: memref<16x64xf32, #tpu.memory_space<vmem>>, %arg1: memref<64x128xbf16, #tpu.memory_space<vmem>>, %arg2: memref<1x128xf32, #tpu.memory_space<vmem>>, %arg3: memref<128x128xbf16, #tpu.memory_space<vmem>>, %arg4: memref<1x128xf32, #tpu.memory_space<vmem>>, %arg5: memref<128x64xbf16, #tpu.memory_space<vmem>>, %arg6: memref<1x64xf32, #tpu.memory_space<vmem>>, %arg7: memref<128x64xbf16, #tpu.memory_space<vmem>>, %arg8: memref<1x64xf32, #tpu.memory_space<vmem>>, %arg9: memref<16x64xf32, #tpu.memory_space<vmem>>, %arg10: memref<64x128xbf16, #tpu.memory_space<vmem>>, %arg11: memref<1x128xf32, #tpu.memory_space<vmem>>, %arg12: memref<128x128xbf16, #tpu.memory_space<vmem>>, %arg13: memref<1x128xf32, #tpu.memory_space<vmem>>, %arg14: memref<16x128xbf16, #tpu.memory_space<vmem>>, %arg15: memref<16x128xf32, #tpu.memory_space<vmem>>) attributes {dimension_semantics = [], scalar_prefetch = 0 : i64, scratch_operands = 0 : i64, tpu.core_type = #tpu.core_type<tc>} {
    %c0 = arith.constant 0 : index
    %c0_0 = arith.constant 0 : index
    %0 = vector.load %arg0[%c0, %c0_0] : memref<16x64xf32, #tpu.memory_space<vmem>>, vector<16x64xf32>
    %1 = arith.truncf %0 : vector<16x64xf32> to vector<16x64xbf16>
    %c0_1 = arith.constant 0 : index
    %c0_2 = arith.constant 0 : index
    %2 = vector.load %arg1[%c0_1, %c0_2] : memref<64x128xbf16, #tpu.memory_space<vmem>>, vector<64x128xbf16>
    %cst = arith.constant dense<0.000000e+00> : vector<16x128xf32>
    %3 = tpu.matmul %1, %2, %cst {dimension_numbers = #tpu.dot_dimension_numbers<[1], [0], [0], [1], [0, 0, 1, 1], [], []>} : vector<16x64xbf16>, vector<64x128xbf16>, vector<16x128xf32> -> vector<16x128xf32>
    %c0_3 = arith.constant 0 : index
    %c0_4 = arith.constant 0 : index
    %4 = vector.load %arg2[%c0_3, %c0_4] : memref<1x128xf32, #tpu.memory_space<vmem>>, vector<1x128xf32>
    %5 = vector.broadcast %4 : vector<1x128xf32> to vector<16x128xf32>
    %6 = arith.addf %3, %5 : vector<16x128xf32>
    %cst_5 = arith.constant 0.000000e+00 : f32
    %7 = vector.broadcast %cst_5 : f32 to vector<16x128xf32>
    %8 = arith.maximumf %6, %7 : vector<16x128xf32>
    %9 = arith.truncf %8 : vector<16x128xf32> to vector<16x128xbf16>
    %c0_6 = arith.constant 0 : index
    %c0_7 = arith.constant 0 : index
    %10 = vector.load %arg3[%c0_6, %c0_7] : memref<128x128xbf16, #tpu.memory_space<vmem>>, vector<128x128xbf16>
    %cst_8 = arith.constant dense<0.000000e+00> : vector<16x128xf32>
    %11 = tpu.matmul %9, %10, %cst_8 {dimension_numbers = #tpu.dot_dimension_numbers<[1], [0], [0], [1], [0, 0, 1, 1], [], []>} : vector<16x128xbf16>, vector<128x128xbf16>, vector<16x128xf32> -> vector<16x128xf32>
    %c0_9 = arith.constant 0 : index
    %c0_10 = arith.constant 0 : index
    %12 = vector.load %arg4[%c0_9, %c0_10] : memref<1x128xf32, #tpu.memory_space<vmem>>, vector<1x128xf32>
    %13 = vector.broadcast %12 : vector<1x128xf32> to vector<16x128xf32>
    %14 = arith.addf %11, %13 : vector<16x128xf32>
    %cst_11 = arith.constant 0.000000e+00 : f32
    %15 = vector.broadcast %cst_11 : f32 to vector<16x128xf32>
    %16 = arith.maximumf %14, %15 : vector<16x128xf32>
    %17 = arith.truncf %16 : vector<16x128xf32> to vector<16x128xbf16>
    %c0_12 = arith.constant 0 : index
    %c0_13 = arith.constant 0 : index
    %18 = vector.load %arg5[%c0_12, %c0_13] : memref<128x64xbf16, #tpu.memory_space<vmem>>, vector<128x64xbf16>
    %cst_14 = arith.constant dense<0.000000e+00> : vector<16x64xf32>
    %19 = tpu.matmul %17, %18, %cst_14 {dimension_numbers = #tpu.dot_dimension_numbers<[1], [0], [0], [1], [0, 0, 1, 1], [], []>} : vector<16x128xbf16>, vector<128x64xbf16>, vector<16x64xf32> -> vector<16x64xf32>
    %c0_15 = arith.constant 0 : index
    %c0_16 = arith.constant 0 : index
    %20 = vector.load %arg6[%c0_15, %c0_16] : memref<1x64xf32, #tpu.memory_space<vmem>>, vector<1x64xf32>
    %21 = vector.broadcast %20 : vector<1x64xf32> to vector<16x64xf32>
    %22 = arith.addf %19, %21 : vector<16x64xf32>
    %c0_17 = arith.constant 0 : index
    %c0_18 = arith.constant 0 : index
    %23 = vector.load %arg7[%c0_17, %c0_18] : memref<128x64xbf16, #tpu.memory_space<vmem>>, vector<128x64xbf16>
    %cst_19 = arith.constant dense<0.000000e+00> : vector<16x64xf32>
    %24 = tpu.matmul %17, %23, %cst_19 {dimension_numbers = #tpu.dot_dimension_numbers<[1], [0], [0], [1], [0, 0, 1, 1], [], []>} : vector<16x128xbf16>, vector<128x64xbf16>, vector<16x64xf32> -> vector<16x64xf32>
    %c0_20 = arith.constant 0 : index
    %c0_21 = arith.constant 0 : index
    %25 = vector.load %arg8[%c0_20, %c0_21] : memref<1x64xf32, #tpu.memory_space<vmem>>, vector<1x64xf32>
    %26 = vector.broadcast %25 : vector<1x64xf32> to vector<16x64xf32>
    %27 = arith.addf %24, %26 : vector<16x64xf32>
    %cst_22 = arith.constant 5.000000e-01 : f32
    %28 = vector.broadcast %cst_22 : f32 to vector<16x64xf32>
    %29 = arith.mulf %28, %27 : vector<16x64xf32>
    %30 = math.exp %29 : vector<16x64xf32>
    %c0_23 = arith.constant 0 : index
    %c0_24 = arith.constant 0 : index
    %31 = vector.load %arg9[%c0_23, %c0_24] : memref<16x64xf32, #tpu.memory_space<vmem>>, vector<16x64xf32>
    %32 = arith.mulf %31, %30 : vector<16x64xf32>
    %33 = arith.addf %22, %32 : vector<16x64xf32>
    %34 = arith.truncf %33 : vector<16x64xf32> to vector<16x64xbf16>
    %c0_25 = arith.constant 0 : index
    %c0_26 = arith.constant 0 : index
    %35 = vector.load %arg10[%c0_25, %c0_26] : memref<64x128xbf16, #tpu.memory_space<vmem>>, vector<64x128xbf16>
    %cst_27 = arith.constant dense<0.000000e+00> : vector<16x128xf32>
    %36 = tpu.matmul %34, %35, %cst_27 {dimension_numbers = #tpu.dot_dimension_numbers<[1], [0], [0], [1], [0, 0, 1, 1], [], []>} : vector<16x64xbf16>, vector<64x128xbf16>, vector<16x128xf32> -> vector<16x128xf32>
    %c0_28 = arith.constant 0 : index
    %c0_29 = arith.constant 0 : index
    %37 = vector.load %arg11[%c0_28, %c0_29] : memref<1x128xf32, #tpu.memory_space<vmem>>, vector<1x128xf32>
    %38 = vector.broadcast %37 : vector<1x128xf32> to vector<16x128xf32>
    %39 = arith.addf %36, %38 : vector<16x128xf32>
    %cst_30 = arith.constant 0.000000e+00 : f32
    %40 = vector.broadcast %cst_30 : f32 to vector<16x128xf32>
    %41 = arith.maximumf %39, %40 : vector<16x128xf32>
    %42 = arith.truncf %41 : vector<16x128xf32> to vector<16x128xbf16>
    %c0_31 = arith.constant 0 : index
    %c0_32 = arith.constant 0 : index
    %43 = vector.load %arg12[%c0_31, %c0_32] : memref<128x128xbf16, #tpu.memory_space<vmem>>, vector<128x128xbf16>
    %cst_33 = arith.constant dense<0.000000e+00> : vector<16x128xf32>
    %44 = tpu.matmul %42, %43, %cst_33 {dimension_numbers = #tpu.dot_dimension_numbers<[1], [0], [0], [1], [0, 0, 1, 1], [], []>} : vector<16x128xbf16>, vector<128x128xbf16>, vector<16x128xf32> -> vector<16x128xf32>
    %c0_34 = arith.constant 0 : index
    %c0_35 = arith.constant 0 : index
    %45 = vector.load %arg13[%c0_34, %c0_35] : memref<1x128xf32, #tpu.memory_space<vmem>>, vector<1x128xf32>
    %46 = vector.broadcast %45 : vector<1x128xf32> to vector<16x128xf32>
    %47 = arith.addf %44, %46 : vector<16x128xf32>
    %cst_36 = arith.constant 0.000000e+00 : f32
    %48 = vector.broadcast %cst_36 : f32 to vector<16x128xf32>
    %49 = arith.maximumf %47, %48 : vector<16x128xf32>
    %50 = arith.truncf %49 : vector<16x128xf32> to vector<16x128xbf16>
    %c0_37 = arith.constant 0 : index
    %c0_38 = arith.constant 0 : index
    %51 = vector.load %arg14[%c0_37, %c0_38] : memref<16x128xbf16, #tpu.memory_space<vmem>>, vector<16x128xbf16>
    tpu.vector_store %arg14[%c0_37, %c0_38], %50 {strides = array<i32>} : memref<16x128xbf16, #tpu.memory_space<vmem>>, vector<16x128xbf16>,
    %c0_39 = arith.constant 0 : index
    %c0_40 = arith.constant 0 : index
    %52 = vector.load %arg15[%c0_39, %c0_40] : memref<16x128xf32, #tpu.memory_space<vmem>>, vector<16x64xf32>
    tpu.vector_store %arg15[%c0_39, %c0_40], %22 {strides = array<i32>} : memref<16x128xf32, #tpu.memory_space<vmem>>, vector<16x64xf32>,
    %c0_41 = arith.constant 0 : index
    %c64 = arith.constant 64 : index
    %53 = vector.load %arg15[%c0_41, %c64] : memref<16x128xf32, #tpu.memory_space<vmem>>, vector<16x64xf32>
    tpu.vector_store %arg15[%c0_41, %c64], %27 {strides = array<i32>} : memref<16x128xf32, #tpu.memory_space<vmem>>, vector<16x64xf32>,
    return
  }
}

module attributes {stable_mosaic.version = 11 : i64} {
  func.func @_decoder_out_kernel(%arg0: i32, %arg1: memref<16x128xbf16, #tpu.memory_space<vmem>>, %arg2: memref<128x256xbf16, #tpu.memory_space<vmem>>, %arg3: memref<1x256xf32, #tpu.memory_space<vmem>>, %arg4: memref<16x256xbf16, #tpu.memory_space<vmem>>) attributes {dimension_semantics = [#tpu.dimension_semantics<parallel>], iteration_bounds = array<i64: 2>, scalar_prefetch = 0 : i64, scratch_operands = 0 : i64, tpu.core_type = #tpu.core_type<tc>, window_params = [{pipeline_mode = #tpu.pipeline_mode<synchronous>, transform_indices = @transform_0, window_bounds = array<i64: 16, 128>}, {transform_indices = @transform_1, window_bounds = array<i64: 128, 256>}, {transform_indices = @transform_2, window_bounds = array<i64: 1, 256>}, {transform_indices = @transform_3, window_bounds = array<i64: 16, 256>}]} {
    %c0 = arith.constant 0 : index
    %c0_0 = arith.constant 0 : index
    %0 = vector.load %arg1[%c0, %c0_0] : memref<16x128xbf16, #tpu.memory_space<vmem>>, vector<16x128xbf16>
    %c0_1 = arith.constant 0 : index
    %c0_2 = arith.constant 0 : index
    %1 = vector.load %arg2[%c0_1, %c0_2] : memref<128x256xbf16, #tpu.memory_space<vmem>>, vector<128x256xbf16>
    %cst = arith.constant dense<0.000000e+00> : vector<16x256xf32>
    %2 = tpu.matmul %0, %1, %cst {dimension_numbers = #tpu.dot_dimension_numbers<[1], [0], [0], [1], [0, 0, 1, 1], [], []>} : vector<16x128xbf16>, vector<128x256xbf16>, vector<16x256xf32> -> vector<16x256xf32>
    %c0_3 = arith.constant 0 : index
    %c0_4 = arith.constant 0 : index
    %3 = vector.load %arg3[%c0_3, %c0_4] : memref<1x256xf32, #tpu.memory_space<vmem>>, vector<1x256xf32>
    %4 = vector.broadcast %3 : vector<1x256xf32> to vector<16x256xf32>
    %5 = arith.addf %2, %4 : vector<16x256xf32>
    %cst_5 = arith.constant 0.000000e+00 : f32
    %6 = vector.broadcast %cst_5 : f32 to vector<16x256xf32>
    %7 = arith.subf %6, %5 : vector<16x256xf32>
    %8 = math.exp %7 : vector<16x256xf32>
    %cst_6 = arith.constant 1.000000e+00 : f32
    %9 = vector.broadcast %cst_6 : f32 to vector<16x256xf32>
    %10 = arith.addf %9, %8 : vector<16x256xf32>
    %cst_7 = arith.constant 1.000000e+00 : f32
    %11 = vector.broadcast %cst_7 : f32 to vector<16x256xf32>
    %12 = arith.divf %11, %10 : vector<16x256xf32>
    %13 = arith.truncf %12 : vector<16x256xf32> to vector<16x256xbf16>
    %c0_8 = arith.constant 0 : index
    %c0_9 = arith.constant 0 : index
    %14 = vector.load %arg4[%c0_8, %c0_9] : memref<16x256xbf16, #tpu.memory_space<vmem>>, vector<16x256xbf16>
    tpu.vector_store %arg4[%c0_8, %c0_9], %13 {strides = array<i32>} : memref<16x256xbf16, #tpu.memory_space<vmem>>, vector<16x256xbf16>,
    return
  }
  func.func @transform_0(%arg0: i32) -> (i32, i32) {
    %c0_i32 = arith.constant 0 : i32
    %c0_i32_0 = arith.constant 0 : i32
    %c0_i32_1 = arith.constant 0 : i32
    return %c0_i32, %c0_i32_0 : i32, i32
  }
  func.func @transform_1(%arg0: i32) -> (i32, i32) {
    %c0_i32 = arith.constant 0 : i32
    %c0_i32_0 = arith.constant 0 : i32
    return %c0_i32, %arg0 : i32, i32
  }
  func.func @transform_2(%arg0: i32) -> (i32, i32) {
    %c0_i32 = arith.constant 0 : i32
    %c0_i32_0 = arith.constant 0 : i32
    return %c0_i32, %arg0 : i32, i32
  }
  func.func @transform_3(%arg0: i32) -> (i32, i32) {
    %c0_i32 = arith.constant 0 : i32
    %c0_i32_0 = arith.constant 0 : i32
    return %c0_i32, %arg0 : i32, i32
  }
}

</mosaic_0001>

<bundles_post_ra>
// kernel: recvae_forward.3
= control target key start
LH: loop header
LB: loop body
LE: loop exit
PB: predicated region body
PF: predicated region fallthrough
CT: control target
= control target key end

     0   :  { %8 = vsyncpa [#allocation4], 0  ;;  %s922_s0 = inlined_call_operand.vmem [shape: bf16[16,128], index: 0, kind: input, shape index: {}]   ;;  %s923_s1 = inlined_call_operand.vmem [shape: bf16[128,500], index: 1, kind: input, shape index: {}]   ;;  %s924_s2 = inlined_call_operand.vmem [shape: f32[1,500], index: 2, kind: input, shape index: {}]   ;;  %s925_s3 = inlined_call_operand.hbm [shape: bf16[16,500], index: 3, kind: output, shape index: {}]  }
   0x1   :  { %10 = vsyncpa [#allocation4 + $0x1], 0  ;;  %s785_s12 = smov 0   ;;  %s787_s13 = smov 0  }
   0x2   :  { %s789_s14 = smov 0   ;;  %s791_s15 = smov 0  }
   0x3 LB: > { %s806_s16 = sadd.s32 4294967295, %s758_s15   ;;  %s574_s17 = sadd.s32 4294967294, %s758_s15   ;;  %s758_s15 = sphi %s791_s15, %s931_s15   ;;  %s754_s14 = sphi %s789_s14, %s930_s14   ;;  %s750_s13 = sphi %s787_s13, %s929_s13   ;;  %s746_s12 = sphi %s785_s12, %s928_s12  }
   0x4   : > { %s810_s18 = sadd.s32 1, %s758_s15   ;;  %s44_s19 = sadd.s32 1, %s754_s14 }
   0x5   : > { %s41_s20 = ssub.s32 %s758_s15, %s810_s18  ;;  %p51_p0 = scmp.ne.s32.totalorder %s754_s14, %s750_s13 }
   0x6   : > { %p42_p1 = scmp.eq.s32.totalorder %s41_s20, 0  ;;  %p52_p2 = scmp.eq.s32.totalorder %s758_s15, 0 }
   0x7   : > { %p107_p3 = scmp.eq.s32.totalorder %s806_s16, 1  ;;  %p112_p4 = scmp.ne.s32.totalorder %s750_s13, %s746_s12 }
   0x8   : > { %s822_s21 = scalar_select %p42_p1, %s754_s14, %s44_s19  }
   0x9   : > { %p53_p5 = por %p52_p2, %p51_p0  ;;  %p824_p6 = por %p107_p3, %p51_p0 }
   0xa   : > { %p113_p7 = scmp.eq.s32.totalorder %s574_s17, 1  ;;  %p576_p9 = scmp.ge.s32.totalorder %s758_s15, 2 }
   0xc   : > { %p828_p8 = por %p113_p7, %p112_p4  ;;  %132 = sbr.rel (%p576_p9) target bundleno = 31 (0x1f), region = 20 }
  0x13   : > { %135 = sbr.rel (!%p53_p5) target bundleno = 31 (0x1f), region = 24  ;;  %s137_s24 = sand.u32 (%p53_p5), 1, %s754_s14  }
  0x14   : > { %s608_s25 = sshll.u32 (%p53_p5), %s758_s15, 3  ;;  %s577_s26 = sshll.u32 (%p53_p5), %s137_s24, 7 }
  0x15   : > { %s840_s29 = scalar_lea.vmem (%p53_p5), %s923_s1, %s608_s25  ;;  %s139_s30 = scalar_lea.vmem (%p53_p5), [#allocation2], %s577_s26 }
  0x16   : > { %v200_v0 = vld [vmem:[%s840_s29] sm:$0xff] (%p53_p5)  ;;  %v202_v1 = vld [vmem:[%s840_s29 + $0x10] sm:$0xff] (%p53_p5) }
  0x17   : > { %v204_v2 = vld [vmem:[%s840_s29 + $0x20] sm:$0xff] (%p53_p5)  ;;  %201 = vst [vmem:[%s139_s30] sm:$0xff] (%p53_p5), %v200_v0  ;;  %203 = vst [vmem:[%s139_s30 + $0x8] sm:$0xff] (%p53_p5), %v202_v1  ;;  %v206_v3 = vld [vmem:[%s840_s29 + $0x30] sm:$0xff] (%p53_p5) }
  0x18   : > { %205 = vst [vmem:[%s139_s30 + $0x10] sm:$0xff] (%p53_p5), %v204_v2  ;;  %v208_v4 = vld [vmem:[%s840_s29 + $0x40] sm:$0xff] (%p53_p5)  ;;  %v210_v5 = vld [vmem:[%s840_s29 + $0x50] sm:$0xff] (%p53_p5)  ;;  %207 = vst [vmem:[%s139_s30 + $0x18] sm:$0xff] (%p53_p5), %v206_v3 }
  0x19   : > { %209 = vst [vmem:[%s139_s30 + $0x20] sm:$0xff] (%p53_p5), %v208_v4  ;;  %211 = vst [vmem:[%s139_s30 + $0x28] sm:$0xff] (%p53_p5), %v210_v5  ;;  %v212_v6 = vld [vmem:[%s840_s29 + $0x60] sm:$0xff] (%p53_p5)  ;;  %v214_v7 = vld [vmem:[%s840_s29 + $0x70] sm:$0xff] (%p53_p5) }
  0x1a   : > { %v216_v8 = vld [vmem:[%s840_s29 + $0x80] sm:$0xff]  ;;  %213 = vst [vmem:[%s139_s30 + $0x30] sm:$0xff] %v212_v6  ;;  %215 = vst [vmem:[%s139_s30 + $0x38] sm:$0xff] %v214_v7  ;;  %v218_v9 = vld [vmem:[%s840_s29 + $0x90] sm:$0xff] }
  0x1b   : > { %217 = vst [vmem:[%s139_s30 + $0x40] sm:$0xff] %v216_v8  ;;  %v220_v10 = vld [vmem:[%s840_s29 + $0xa0] sm:$0xff]  ;;  %v222_v11 = vld [vmem:[%s840_s29 + $0xb0] sm:$0xff]  ;;  %219 = vst [vmem:[%s139_s30 + $0x48] sm:$0xff] %v218_v9 }
  0x1c   : > { %221 = vst [vmem:[%s139_s30 + $0x50] sm:$0xff] %v220_v10  ;;  %223 = vst [vmem:[%s139_s30 + $0x58] sm:$0xff] %v222_v11  ;;  %v224_v12 = vld [vmem:[%s840_s29 + $0xc0] sm:$0xff]  ;;  %v226_v13 = vld [vmem:[%s840_s29 + $0xd0] sm:$0xff] }
  0x1d   : > { %v228_v14 = vld [vmem:[%s840_s29 + $0xe0] sm:$0xff]  ;;  %225 = vst [vmem:[%s139_s30 + $0x60] sm:$0xff] %v224_v12  ;;  %227 = vst [vmem:[%s139_s30 + $0x68] sm:$0xff] %v226_v13  ;;  %v230_v15 = vld [vmem:[%s840_s29 + $0xf0] sm:$0xff] }
  0x1e   : > { %229 = vst [vmem:[%s139_s30 + $0x70] sm:$0xff] %v228_v14  ;;  %231 = vst [vmem:[%s139_s30 + $0x78] sm:$0xff] %v230_v15 }
  0x1f PF: > { %p580_p10 = scmp.ge.s32.totalorder %s758_s15, 1  ;;  %p244_p11 = scmp.lt.s32.totalorder %s758_s15, 3 }
  0x21   : > { %p245_p12 = pnand %p580_p10, %p244_p11 }
  0x22   : > { %s861_s4 = sand.u32 (!%p245_p12), 1, %s750_s13   ;;  %v760_v16 = vmov (!%p245_p12), 0   ;;  %v679_v33 = vld [vmem:[%s922_s0] sm:$0xff] (!%p245_p12)   ;;  %s583_s9 = sshll.u32 (!%p245_p12), %s806_s16, 1  ;;  %v306_v34 = vlaneseq (!%p245_p12) }
  0x23   : > { %248 = sbr.rel (%p245_p12) target bundleno = 333 (0x14d), region = 66  ;;  %s581_s5 = sshll.u32 (!%p245_p12), %s861_s4, 7  ;;  %434 = vmatprep.mubr.bf16.mxu0 (!%p245_p12), %v760_v16 }
  0x24   : > { %s253_s6 = scalar_lea.vmem (!%p245_p12), [#allocation2], %s581_s5  ;;  %p280_p13 = scmp.lt.s32.totalorder (!%p245_p12), %s583_s9, 3  ;;  %v307_v35 = vshrl.u32 (!%p245_p12), %v306_v34, 7 }
  0x25   : > { %v655_v17 = vld [vmem:[%s253_s6 + $0x4] ss:$8 sps:$4 sm:$0xff] (!%p245_p12)   ;;  %v657_v18 = vld [vmem:[%s253_s6] ss:$8 sps:$4 sm:$0xff] (!%p245_p12)   ;;  %v658_v19 = vld [vmem:[%s253_s6 + $0x14] ss:$8 sps:$4 sm:$0xff] (!%p245_p12)  }
  0x26   : > { %402 = vmatprep.subr.bf16.mxu0 (!%p245_p12), %v655_v17  ;;  %v660_v20 = vld [vmem:[%s253_s6 + $0x10] ss:$8 sps:$4 sm:$0xff] (!%p245_p12)   ;;  %v661_v21 = vld [vmem:[%s253_s6 + $0x24] ss:$8 sps:$4 sm:$0xff] (!%p245_p12)   ;;  %v663_v22 = vld [vmem:[%s253_s6 + $0x20] ss:$8 sps:$4 sm:$0xff] (!%p245_p12)  }
  0x27   : > { %403 = vmatpush1.bf16.msra.mxu0 (!%p245_p12), %v657_v18  ;;  %v664_v23 = vld [vmem:[%s253_s6 + $0x34] ss:$8 sps:$4 sm:$0xff] (!%p245_p12)   ;;  %v666_v24 = vld [vmem:[%s253_s6 + $0x30] ss:$8 sps:$4 sm:$0xff] (!%p245_p12)   ;;  %v667_v25 = vld [vmem:[%s253_s6 + $0x44] ss:$8 sps:$4 sm:$0xff] (!%p245_p12)  }
  0x28   : > { %404 = vmatprep.subr.bf16.mxu0 (!%p245_p12), %v658_v19  ;;  %v669_v26 = vld [vmem:[%s253_s6 + $0x40] ss:$8 sps:$4 sm:$0xff] (!%p245_p12)   ;;  %v670_v27 = vld [vmem:[%s253_s6 + $0x54] ss:$8 sps:$4 sm:$0xff] (!%p245_p12)   ;;  %v672_v28 = vld [vmem:[%s253_s6 + $0x50] ss:$8 sps:$4 sm:$0xff] (!%p245_p12)  }
  0x29   : > { %v673_v29 = vld [vmem:[%s253_s6 + $0x64] ss:$8 sps:$4 sm:$0xff] (!%p245_p12)   ;;  %v675_v30 = vld [vmem:[%s253_s6 + $0x60] ss:$8 sps:$4 sm:$0xff] (!%p245_p12)   ;;  %v676_v31 = vld [vmem:[%s253_s6 + $0x74] ss:$8 sps:$4 sm:$0xff] (!%p245_p12)  }
  0x2a   : > { %v678_v32 = vld [vmem:[%s253_s6 + $0x70] ss:$8 sps:$4 sm:$0xff]   ;;  %s933_s9 = smov (!%p280_p13, %s583_s9), 3  ;;  %v308_v36 = vsub.s32 0, %v307_v35  ;;  %v312_v38 = vsub.s32 1, %v307_v35  ;;  %s582_s19 = sshll.u32 %s861_s4, 4 }
  0x2b   : > { %405 = vmatpush1.bf16.msra.mxu0 %v660_v20  ;;  %s282_s17 = scalar_lea.vmem %s924_s2, %s933_s9  ;;  %s611_s20 = sshll.u32 %s806_s16, 7 }
  0x2c   : > { %406 = vmatprep.subr.bf16.mxu0 %v661_v21  ;;  %v304_v37 = vld [vmem:[%s282_s17] sm:$0x3]  ;;  %s277_s24 = scalar_lea.vmem [#allocation3], %s582_s19  ;;  %s876_s28 = scalar_lea.hbm %s925_s3, %s611_s20 }
  0x2d   : > { %v309_v39 = vrot.slane %v304_v37, %v308_v36  ;;  %v313_v40 = vrot.slane %v304_v37, %v312_v38  ;;  %s497_s25 = sshll.u32 %s277_s24, 4  ;;  %s484_s16 = scalar_lea.sflag [#allocation4], %s861_s4  ;;  %s878_s25 = int_to_ptr.vmem [resolvable:$true] %s497_s25 }
  0x2e   : > { %s696_s29 = scalar_lea.vmem %s878_s25, 256  ;;  %s761_s30 = smov [#allocation3]  }
  0x2f   : > { %407 = vmatpush1.bf16.msra.mxu0 %v663_v22  ;;  %p697_p0 = scmp.ne.s32.totalorder %s878_s25, %s696_s29  ;;  %s700_s5 = sshll.u32 %s761_s30, 4  ;;  %s701_s5 = int_to_ptr.vmem [resolvable:$false] %s700_s5 }
  0x30   : > { %408 = vmatprep.subr.bf16.mxu0 %v664_v23  ;;  %s702_s6 = scalar_lea.vmem %s701_s5, 512  ;;  %p703_p3 = scmp.lt.s32.totalorder %s878_s25, %s701_s5 }
  0x31   : > { %p698_p1 = pnand %p697_p0, %p824_p6  ;;  %p704_p4 = scmp.lt.s32.totalorder %s702_s6, %s696_s29 }
  0x33   : > { %409 = vmatpush1.bf16.msra.mxu0 %v666_v24  ;;  %p699_p2 = pneg %p698_p1  ;;  %p705_p5 = por %p704_p4, %p703_p3 }
  0x34   : > { %410 = vmatprep.subr.bf16.mxu0 %v667_v25 }
  0x35   : > { %p706_p7 = pnand %p705_p5, %p699_p2 }
  0x37   : > { %411 = vmatpush1.bf16.msra.mxu0 %v669_v26 }
  0x38   : > { %412 = vmatprep.subr.bf16.mxu0 %v670_v27 }
  0x3b   : > { %413 = vmatpush1.bf16.msra.mxu0 %v672_v28 }
  0x3c   : > { %414 = vmatprep.subr.bf16.mxu0 %v673_v29 }
  0x3f   : > { %415 = vmatpush1.bf16.msra.mxu0 %v675_v30 }
  0x40   : > { %416 = vmatprep.subr.bf16.mxu0 %v676_v31 }
  0x43   : > { %417 = vmatpush1.bf16.msra.mxu0 %v678_v32 }
  0x46   : > { %435 = vmatmul.mubr.bf16.vlgmr.msra.gmra.mrb[0].mxu0 %v679_v33 }
 0x119   : > { %v436_v41 = vpop.f32.mrb[0].mxu0 }
 0x11a   : > { %v437_v42 = vadd.f32 %v436_v41, %v309_v39  ;;  %v438_v43 = vpop.f32.mrb[1].mxu0 }
 0x11b   : > { %v439_v44 = vadd.f32 %v438_v43, %v313_v40  ;;  %v440_v45 = vpop.f32.mrb[2].mxu0 }
 0x11c   : > { %v445_v46 = vsub.f32 0.0, %v437_v42  ;;  %v441_v47 = vadd.f32 %v440_v45, %v309_v39  ;;  %v442_v48 = vpop.f32.mrb[3].mxu0 }
 0x11d   : > { %v446_v49 = vsub.f32 0.0, %v439_v44  ;;  %v443_v50 = vadd.f32 %v442_v48, %v313_v40 }
 0x11e   : > { %v449_v51 = vmul.f32 1.442695, %v445_v46  ;;  %v447_v52 = vsub.f32 0.0, %v441_v47 }
 0x11f   : > { %v451_v53 = vmul.f32 1.442695, %v446_v49  ;;  %v448_v54 = vsub.f32 0.0, %v443_v50 }
 0x120   : > { %680 = vpow2.f32 %v449_v51  ;;  %v453_v55 = vmul.f32 1.442695, %v447_v52 }
 0x121   : > { %682 = vpow2.f32 %v451_v53  ;;  %v455_v56 = vmul.f32 1.442695, %v448_v54 }
 0x122   : > { %684 = vpow2.f32 %v453_v55 }
 0x123   : > { %686 = vpow2.f32 %v455_v56 }
 0x12a   : > { %v681_v57 = vpop.eup %680 }
 0x12b   : > { %v683_v58 = vpop.eup %682  ;;  %v457_v59 = vadd.f32 1.0, %v681_v57 }
 0x12c   : > { %v685_v60 = vpop.eup %684  ;;  %v458_v61 = vadd.f32 1.0, %v683_v58 }
 0x12d   : > { %v687_v62 = vpop.eup %686  ;;  %688 = vrcp.f32 %v457_v59  ;;  %v459_v63 = vadd.f32 1.0, %v685_v60 }
 0x12e   : > { %690 = vrcp.f32 %v458_v61  ;;  %v460_v0 = vadd.f32 1.0, %v687_v62 }
 0x12f   : > { %692 = vrcp.f32 %v459_v63 }
 0x130   : > { %694 = vrcp.f32 %v460_v0 }
 0x137   : > { %v689_v1 = vpop.eup %688 }
 0x138   : > { %v691_v2 = vpop.eup %690 }
 0x139   : > { %v693_v3 = vpop.eup %692  ;;  %v609_v4 = vpack.c.bf16 %v691_v2, %v689_v1 }
 0x13a   : > { %v695_v5 = vpop.eup %694 }
 0x13b   : > { %v610_v6 = vpack.c.bf16 %v695_v5, %v693_v3  ;;  %481 = vst [vmem:[%s277_s24] sm:$0xff] %v609_v4 }
 0x13d   : > { %482 = vst [vmem:[%s277_s24 + $0x8] sm:$0xff] %v610_v6 }
 0x13e   : > { %709 = shalt.err (!%p706_p7)
}
 0x13f   : > { %s710_s7 = scalar_lea.hbm %s876_s28, 256  ;;  %s714_s10 = scalar_lea.hbm %s925_s3, 512 }
 0x140   : > { %p711_p10 = scmp.ne.s32.totalorder %s876_s28, %s710_s7  ;;  %p715_p13 = scmp.lt.u32.totalorder %s876_s28, %s925_s3 }
 0x141   : > { %p716_p0 = scmp.lt.u32.totalorder %s714_s10, %s710_s7  ;;  %p718_p2 = scmp.lt.u32.totalorder %s710_s7, %s876_s28 }
 0x142   : > { %p712_p11 = pnand %p711_p10, %p824_p6 }
 0x143   : > { %p717_p1 = por %p716_p0, %p715_p13 }
 0x144   : > { %p713_p12 = pneg %p712_p11 }
 0x145   : > { %p719_p3 = por %p718_p2, %p717_p1 }
 0x147   : > { %p720_p4 = pnand %p719_p3, %p713_p12 }
 0x149   : > { %723 = shalt.err (!%p720_p4)
}
 0x14a   : > { %s762_s19 = smov 128   ;;  %s763_s20 = smov 256  }
 0x14b   : > { %s764_s24 = smov 8  }
 0x14c   : > { %612 = dma.vmem_to_hbm [thread:$0]  (%p824_p6), %s878_s25, 256, %s876_s28, %s484_s16, %s762_s19, %s763_s20, %s764_s24  }
 0x14d PF: > { %s512_s26 = sand.u32 1, %s746_s12   ;;  %p615_p5 = pnand %p576_p9, %p828_p8 }
 0x14e   : > { %s513_s27 = scalar_lea.sflag [#allocation4], %s512_s26 }
 0x14f   : > { %741 = dma.done.wait (!%p615_p5), %s513_s27, 256  }
 0x150   : > { %743 = vsyncadd (!%p615_p5), %s513_s27, 4294967040  ;;  %p13_p7 = scmp.ge.s32.totalorder %s810_s18, 4   ;;  %s928_s12 = smov %s750_s13 }
 0x151   : > { %s929_s13 = smov %s754_s14  ;;  %s930_s14 = smov %s822_s21 }
 0x152   : > { %s931_s15 = smov %s810_s18  ;;  %15 = sbr.rel (!%p13_p7) target bundleno = 3 (0x3), region = 113 }
 0x159   :  { %518 = vsyncpa [#allocation4], 1 }
 0x15a   :  { %520 = vsyncpa [#allocation4 + $0x1], 1 }

// kernel: recvae_forward.2
= control target key start
LH: loop header
LB: loop body
LE: loop exit
PB: predicated region body
PF: predicated region fallthrough
CT: control target
= control target key end

     0   :  { %21 = vsyncpa [#allocation3], 0  ;;  %s1621_s0 = inlined_call_operand.vmem [shape: f32[16,64], index: 0, kind: input, shape index: {}]   ;;  %s1622_s1 = inlined_call_operand.vmem [shape: bf16[64,128], index: 1, kind: input, shape index: {}]   ;;  %s1623_s2 = inlined_call_operand.vmem [shape: f32[1,128], index: 2, kind: input, shape index: {}]   ;;  %s1624_s3 = inlined_call_operand.vmem [shape: bf16[128,128], index: 3, kind: input, shape index: {}]   ;;  %s1625_s4 = inlined_call_operand.hbm [shape: f32[1,128], index: 4, kind: input, shape index: {}]   ;;  %s1626_s5 = inlined_call_operand.vmem [shape: bf16[128,64], index: 5, kind: input, shape index: {}]   ;;  %s1627_s6 = inlined_call_operand.hbm [shape: f32[1,64], index: 6, kind: input, shape index: {}]   ;;  %s1628_s7 = inlined_call_operand.vmem [shape: bf16[128,64], index: 7, kind: input, shape index: {}]   ;;  %s1629_s8 = inlined_call_operand.hbm [shape: f32[1,64], index: 8, kind: input, shape index: {}]   ;;  %s1630_s9 = inlined_call_operand.hbm [shape: f32[16,64], index: 9, kind: input, shape index: {}]   ;;  %s1631_s10 = inlined_call_operand.hbm [shape: bf16[64,128], index: 10, kind: input, shape index: {}]   ;;  %s1632_s11 = inlined_call_operand.hbm [shape: f32[1,128], index: 11, kind: input, shape index: {}]   ;;  %s1633_s12 = inlined_call_operand.vmem [shape: bf16[128,128], index: 12, kind: input, shape index: {}]   ;;  %s1634_s13 = inlined_call_operand.hbm [shape: f32[1,128], index: 13, kind: input, shape index: {}]   ;;  %s1635_s14 = inlined_call_operand.vmem [shape: bf16[16,128], index: 14, kind: output, shape index: {0}]   ;;  %s1636_s15 = inlined_call_operand.vmem [shape: f32[16,128], index: 15, kind: output, shape index: {1}]  }
   0x1   :  { %22 = vsyncpa [#allocation5], 0 }
   0x2   :  { %23 = vsyncpa [#allocation8], 0 }
   0x3   :  { %24 = vsyncpa [#allocation11], 0  ;;  %s1238_s18 = smov [#allocation4]   ;;  %s1239_s20 = smov [#allocation7]  }
   0x4   :  { %s51_s19 = sshll.u32 %s1238_s18, 4  ;;  %s72_s21 = sshll.u32 %s1239_s20, 4  ;;  %s52_s19 = int_to_ptr.vmem [resolvable:$true] %s51_s19  ;;  %s1331_s21 = int_to_ptr.vmem [resolvable:$true] %s72_s21 }
   0x5   :  { %s1076_s24 = scalar_lea.hbm %s1627_s6, 16 }
   0x6   :  { %p1077_p0 = scmp.ne.s32.totalorder %s1627_s6, %s1076_s24  ;;  %p1080_p1 = scmp.lt.u32.totalorder %s1076_s24, %s1627_s6 }
   0x8   :  { %p1082_p2 = pnand %p1080_p1, %p1077_p0 }
   0xa   :  { %1085 = shalt.err (!%p1082_p2)
}
   0xb   :  { %s1086_s29 = scalar_lea.vmem %s52_s19, 16  ;;  %s1090_s30 = scalar_lea.vmem %s52_s19, 32 }
   0xc   :  { %p1087_p3 = scmp.ne.s32.totalorder %s52_s19, %s1086_s29  ;;  %p1091_p4 = scmp.lt.s32.totalorder %s52_s19, %s52_s19 }
   0xd   :  { %p1092_p5 = scmp.lt.s32.totalorder %s1090_s30, %s1086_s29 }
   0xf   :  { %p1093_p6 = por %p1092_p5, %p1091_p4 }
  0x11   :  { %p1094_p7 = pnand %p1093_p6, %p1087_p3 }
  0x13   :  { %1097 = shalt.err (!%p1094_p7)
}
  0x14   :  { %54 = dma.hbm_to_vmem [thread:$0]  %s1627_s6, 16, %s52_s19, [#allocation5]  }
  0x15   :  { %s1098_s22 = scalar_lea.hbm %s1630_s9, 256 }
  0x16   :  { %p1099_p8 = scmp.ne.s32.totalorder %s1630_s9, %s1098_s22  ;;  %p1102_p9 = scmp.lt.u32.totalorder %s1098_s22, %s1630_s9 }
  0x18   :  { %p1104_p10 = pnand %p1102_p9, %p1099_p8 }
  0x1a   :  { %1107 = shalt.err (!%p1104_p10)
}
  0x1b   :  { %s1108_s27 = scalar_lea.vmem %s1331_s21, 256  ;;  %p1113_p12 = scmp.lt.s32.totalorder %s1331_s21, %s1331_s21 }
  0x1c   :  { %p1109_p11 = scmp.ne.s32.totalorder %s1331_s21, %s1108_s27  ;;  %p1114_p13 = scmp.lt.s32.totalorder %s1108_s27, %s1108_s27 }
  0x1e   :  { %p1115_p0 = por %p1114_p13, %p1113_p12 }
  0x20   :  { %p1116_p1 = pnand %p1115_p0, %p1109_p11 }
  0x22   :  { %1119 = shalt.err (!%p1116_p1)
}
  0x23   :  { %s1240_s6 = smov 128   ;;  %s1241_s19 = smov 8  }
  0x24   :  { %78 = dma.hbm_to_vmem [thread:$0]  %s1630_s9, 256, %s1331_s21, [#allocation8], %s1240_s6, %s1240_s6, %s1241_s19  }
  0x25   :  { %s1242_s30 = smov [#allocation10]   ;;  %s1243_s17 = smov [#allocation2]  }
  0x26   :  { %s97_s16 = sshll.u32 %s1242_s30, 4  ;;  %s39_s18 = sshll.u32 %s1243_s17, 4  ;;  %s98_s16 = int_to_ptr.vmem [resolvable:$true] %s97_s16  ;;  %s40_s18 = int_to_ptr.vmem [resolvable:$true] %s39_s18 }
  0x27   :  { %s1120_s23 = scalar_lea.hbm %s1632_s11, 16 }
  0x28   :  { %p1121_p2 = scmp.ne.s32.totalorder %s1632_s11, %s1120_s23  ;;  %p1124_p3 = scmp.lt.u32.totalorder %s1120_s23, %s1632_s11 }
  0x2a   :  { %p1126_p4 = pnand %p1124_p3, %p1121_p2 }
  0x2c   :  { %1129 = shalt.err (!%p1126_p4)
}
  0x2d   :  { %s1130_s9 = scalar_lea.vmem %s98_s16, 16  ;;  %s1134_s21 = scalar_lea.vmem %s98_s16, 32 }
  0x2e   :  { %p1131_p5 = scmp.ne.s32.totalorder %s98_s16, %s1130_s9  ;;  %p1135_p6 = scmp.lt.s32.totalorder %s98_s16, %s98_s16 }
  0x2f   :  { %p1136_p7 = scmp.lt.s32.totalorder %s1134_s21, %s1130_s9 }
  0x31   :  { %p1137_p8 = por %p1136_p7, %p1135_p6 }
  0x33   :  { %p1138_p9 = pnand %p1137_p8, %p1131_p5 }
  0x35   :  { %1141 = shalt.err (!%p1138_p9)
}
  0x36   :  { %100 = dma.hbm_to_vmem [thread:$0]  %s1632_s11, 16, %s98_s16, [#allocation11]  }
  0x37   :  { %s1142_s30 = scalar_lea.hbm %s1625_s4, 16 }
  0x38   :  { %p1143_p10 = scmp.ne.s32.totalorder %s1625_s4, %s1142_s30  ;;  %p1146_p11 = scmp.lt.u32.totalorder %s1142_s30, %s1625_s4 }
  0x3a   :  { %p1148_p12 = pnand %p1146_p11, %p1143_p10 }
  0x3c   :  { %1151 = shalt.err (!%p1148_p12)
}
  0x3d   :  { %s1152_s24 = scalar_lea.vmem %s40_s18, 16  ;;  %s1156_s25 = scalar_lea.vmem %s40_s18, 32 }
  0x3e   :  { %p1153_p13 = scmp.ne.s32.totalorder %s40_s18, %s1152_s24  ;;  %p1157_p0 = scmp.lt.s32.totalorder %s40_s18, %s40_s18 }
  0x3f   :  { %p1158_p1 = scmp.lt.s32.totalorder %s1156_s25, %s1152_s24 }
  0x41   :  { %p1159_p2 = por %p1158_p1, %p1157_p0 }
  0x43   :  { %p1160_p3 = pnand %p1159_p2, %p1153_p13 }
  0x45   :  { %1163 = shalt.err (!%p1160_p3)
}
  0x46   :  { %42 = dma.hbm_to_vmem [thread:$0]  %s1625_s4, 16, %s40_s18, [#allocation3]  }
  0x47   :  { %s1244_s26 = smov [#allocation6]   ;;  %s1245_s9 = smov [#allocation9]  }
  0x48   :  { %s63_s27 = sshll.u32 %s1244_s26, 4  ;;  %s84_s21 = sshll.u32 %s1245_s9, 4  ;;  %s64_s27 = int_to_ptr.vmem [resolvable:$true] %s63_s27  ;;  %s1386_s21 = int_to_ptr.vmem [resolvable:$true] %s84_s21 }
  0x49   :  { %s1164_s28 = scalar_lea.hbm %s1629_s8, 16 }
  0x4a   :  { %p1165_p4 = scmp.ne.s32.totalorder %s1629_s8, %s1164_s28  ;;  %p1168_p5 = scmp.lt.u32.totalorder %s1164_s28, %s1629_s8 }
  0x4c   :  { %p1170_p6 = pnand %p1168_p5, %p1165_p4 }
  0x4e   :  { %1173 = shalt.err (!%p1170_p6)
}
  0x4f   :  { %s1174_s4 = scalar_lea.vmem %s64_s27, 16  ;;  %s1178_s18 = scalar_lea.vmem %s64_s27, 32 }
  0x50   :  { %p1175_p7 = scmp.ne.s32.totalorder %s64_s27, %s1174_s4  ;;  %p1179_p8 = scmp.lt.s32.totalorder %s64_s27, %s64_s27 }
  0x51   :  { %p1180_p9 = scmp.lt.s32.totalorder %s1178_s18, %s1174_s4 }
  0x53   :  { %p1181_p10 = por %p1180_p9, %p1179_p8 }
  0x55   :  { %p1182_p11 = pnand %p1181_p10, %p1175_p7 }
  0x57   :  { %1185 = shalt.err (!%p1182_p11)
}
  0x58   :  { %66 = dma.hbm_to_vmem [thread:$0]  %s1629_s8, 16, %s64_s27, [#allocation5]  }
  0x59   :  { %s1186_s11 = scalar_lea.hbm %s1631_s10, 512 }
  0x5a   :  { %p1187_p12 = scmp.ne.s32.totalorder %s1631_s10, %s1186_s11  ;;  %p1190_p13 = scmp.lt.u32.totalorder %s1186_s11, %s1631_s10 }
  0x5c   :  { %p1192_p0 = pnand %p1190_p13, %p1187_p12 }
  0x5e   :  { %1195 = shalt.err (!%p1192_p0)
}
  0x5f   :  { %s1196_s19 = scalar_lea.vmem %s1386_s21, 512  ;;  %p1201_p2 = scmp.lt.s32.totalorder %s1386_s21, %s1386_s21 }
  0x60   :  { %p1197_p1 = scmp.ne.s32.totalorder %s1386_s21, %s1196_s19  ;;  %p1202_p3 = scmp.lt.s32.totalorder %s1196_s19, %s1196_s19 }
  0x62   :  { %p1203_p4 = por %p1202_p3, %p1201_p2 }
  0x64   :  { %p1204_p5 = pnand %p1203_p4, %p1197_p1 }
  0x66   :  { %1207 = shalt.err (!%p1204_p5)
}
  0x67   :  { %s1246_s8 = smov 64   ;;  %s1247_s27 = smov 4  }
  0x68   :  { %90 = dma.hbm_to_vmem [thread:$0]  %s1631_s10, 512, %s1386_s21, [#allocation8], %s1246_s8, %s1246_s8, %s1247_s27  }
  0x69   :  { %s1248_s30 = smov [#allocation12]   ;;  %s1208_s18 = scalar_lea.hbm %s1634_s13, 16 }
  0x6a   :  { %s109_s17 = sshll.u32 %s1248_s30, 4  ;;  %p1209_p6 = scmp.ne.s32.totalorder %s1634_s13, %s1208_s18  ;;  %s110_s17 = int_to_ptr.vmem [resolvable:$true] %s109_s17 }
  0x6b   :  { %p1212_p7 = scmp.lt.u32.totalorder %s1208_s18, %s1634_s13 }
  0x6d   :  { %p1214_p8 = pnand %p1212_p7, %p1209_p6 }
  0x6f   :  { %1217 = shalt.err (!%p1214_p8)
}
  0x70   :  { %s1218_s11 = scalar_lea.vmem %s110_s17, 16  ;;  %s1222_s10 = scalar_lea.vmem %s110_s17, 32 }
  0x71   :  { %p1219_p9 = scmp.ne.s32.totalorder %s110_s17, %s1218_s11  ;;  %p1223_p10 = scmp.lt.s32.totalorder %s110_s17, %s110_s17 }
  0x72   :  { %p1224_p11 = scmp.lt.s32.totalorder %s1222_s10, %s1218_s11 }
  0x74   :  { %p1225_p12 = por %p1224_p11, %p1223_p10 }
  0x76   :  { %p1226_p13 = pnand %p1225_p12, %p1219_p9 }
  0x78   :  { %1229 = shalt.err (!%p1226_p13)
}
  0x79   :  { %112 = dma.hbm_to_vmem [thread:$0]  %s1634_s13, 16, %s110_s17, [#allocation11]  }
  0x7a   :  { %1230 = dma.done.wait [#allocation3], 16  }
  0x7b   :  { %1231 = vsyncadd [#allocation3], 4294967280 }
  0x7c   :  { %1232 = dma.done.wait [#allocation5], 32  }
  0x7d   :  { %1233 = vsyncadd [#allocation5], 4294967264 }
  0x7e   :  { %1234 = dma.done.wait [#allocation8], 768  }
  0x7f   :  { %1235 = vsyncadd [#allocation8], 4294966528 }
  0x80   :  { %1236 = dma.done.wait [#allocation11], 32  }
  0x81   :  { %1237 = vsyncadd [#allocation11], 4294967264  ;;  %v1249_v0 = vmov 0.0   ;;  %vm1250_vm0 = vmmov 0   ;;  %v1032_v1 = vld [vmem:[%s1622_s1] sm:$0xff]   ;;  %v1033_v2 = vld [vmem:[%s1622_s1 + $0x8] sm:$0xff]  }
  0x82   :  { %915 = vmatprep.subr.bf16.mxu1 %v1249_v0  ;;  %923 = vmatprep.mubr.msk.bf16.mxu1 %vm1250_vm0, %v1249_v0  ;;  %v1034_v3 = vld [vmem:[%s1622_s1 + $0x10] sm:$0xff]   ;;  %v1035_v4 = vld [vmem:[%s1622_s1 + $0x18] sm:$0xff]   ;;  %v135_v5 = vld [vmem:[%s1621_s0] sm:$0xff]  ;;  %vm177_vm1 = vcmask 523264   ;;  %vm797_vm2 = vcmask 1048064  }
  0x83   :  { %947 = vmatprep.subr.bf16.mxu0 %v1249_v0  ;;  %963 = vmatprep.mubr.msk.bf16.mxu0 %vm1250_vm0, %v1249_v0  ;;  %v136_v6 = vld [vmem:[%s1621_s0 + $0x8] sm:$0xff]  ;;  %v1036_v7 = vld [vmem:[%s1624_s3] sm:$0xff]   ;;  %v1038_v10 = vld [vmem:[%s1624_s3 + $0x10] sm:$0xff]  }
  0x84   :  { %916 = vmatpush3.bf16.msra.mxu1 %v1032_v1  ;;  %v137_v8 = vpack.c.bf16 %v136_v6, %v135_v5  ;;  %v1037_v9 = vld [vmem:[%s1624_s3 + $0x8] sm:$0xff]   ;;  %v1039_v11 = vld [vmem:[%s1624_s3 + $0x18] sm:$0xff]   ;;  %v1040_v12 = vld [vmem:[%s1624_s3 + $0x20] sm:$0xff]  }
  0x85   :  { %917 = vmatprep.subr.bf16.mxu1 %v1249_v0  ;;  %v1041_v13 = vld [vmem:[%s1624_s3 + $0x28] sm:$0xff]   ;;  %v1042_v14 = vld [vmem:[%s1624_s3 + $0x30] sm:$0xff]   ;;  %v1043_v15 = vld [vmem:[%s1624_s3 + $0x38] sm:$0xff]  }
  0x86   :  { %v1044_v16 = vld [vmem:[%s1626_s5] sm:$0xff]   ;;  %v1046_v17 = vld [vmem:[%s1626_s5 + $0x8] sm:$0xff]   ;;  %v1048_v18 = vld [vmem:[%s1626_s5 + $0x10] sm:$0xff]  }
  0x87   :  { %948 = vmatpush3.bf16.msra.mxu0 %v1044_v16  ;;  %v1050_v19 = vld [vmem:[%s1626_s5 + $0x18] sm:$0xff]   ;;  %v1052_v20 = vld [vmem:[%s1626_s5 + $0x20] sm:$0xff]   ;;  %v1054_v21 = vld [vmem:[%s1626_s5 + $0x28] sm:$0xff]  }
  0x88   :  { %918 = vmatpush3.bf16.msra.mxu1 %v1033_v2  ;;  %949 = vmatprep.subr.bf16.mxu0 %v1249_v0  ;;  %v812_v22 = vld [vmem:[%s1623_s2] ss:$0 sm:$0xff]  ;;  %v1047_v33 = vld [vmem:[%s1628_s7 + $0x8] sm:$0xff]   ;;  %v1049_v34 = vld [vmem:[%s1628_s7 + $0x10] sm:$0xff]  }
  0x89   :  { %919 = vmatprep.subr.bf16.mxu1 %v1249_v0  ;;  %v1045_v31 = vld [vmem:[%s1628_s7] sm:$0xff]   ;;  %v1051_v35 = vld [vmem:[%s1628_s7 + $0x18] sm:$0xff]   ;;  %v1055_v37 = vld [vmem:[%s1628_s7 + $0x28] sm:$0xff]  }
  0x8a   :  { %v1053_v36 = vld [vmem:[%s1628_s7 + $0x20] sm:$0xff]   ;;  %v1056_v38 = vld [vmem:[%s1626_s5 + $0x30] sm:$0xff]   ;;  %v1058_v40 = vld [vmem:[%s1626_s5 + $0x38] sm:$0xff]  }
  0x8b   :  { %950 = vmatpush3.bf16.msra.mxu0 %v1046_v17  ;;  %v1057_v39 = vld [vmem:[%s1628_s7 + $0x30] sm:$0xff]   ;;  %v1059_v41 = vld [vmem:[%s1628_s7 + $0x38] sm:$0xff]   ;;  %v818_v42 = vld [vmem:[#allocation2] ss:$0 sm:$0xff] }
  0x8c   :  { %920 = vmatpush3.bf16.msra.mxu1 %v1034_v3  ;;  %951 = vmatprep.subr.bf16.mxu0 %v1249_v0  ;;  %v1060_v52 = vld [vmem:[#allocation9] sm:$0xff]   ;;  %v1061_v53 = vld [vmem:[#allocation9 + $0x8] sm:$0xff]   ;;  %v1062_v54 = vld [vmem:[#allocation9 + $0x10] sm:$0xff]  }
  0x8d   :  { %921 = vmatprep.subr.bf16.mxu1 %v1249_v0  ;;  %v1063_v55 = vld [vmem:[#allocation9 + $0x18] sm:$0xff]   ;;  %v827_v56 = vld [vmem:[#allocation4] ss:$0 sm:$0xff]  ;;  %v836_v57 = vld [vmem:[#allocation6] ss:$0 sm:$0xff] }
  0x8f   :  { %952 = vmatpush3.bf16.msra.mxu0 %v1048_v18 }
  0x90   :  { %922 = vmatpush3.bf16.msra.mxu1 %v1035_v4  ;;  %953 = vmatprep.subr.bf16.mxu0 %v1249_v0 }
  0x91   :  { %927 = vmatprep.subr.bf16.mxu1 %v1249_v0 }
  0x93   :  { %924 = vmatmul.mubr.msk.bf16.vlgmr.msra.gmra.mrb[0].mxu1 %vm177_vm1, %v137_v8  ;;  %954 = vmatpush3.bf16.msra.mxu0 %v1050_v19  ;;  %v1064_v19 = vld [vmem:[%s1633_s12] sm:$0xff]  }
  0x94   :  { %928 = vmatpush3.bf16.msra.mxu1 %v1036_v7  ;;  %943 = vmatprep.mubr.msk.bf16.mxu1 %vm1250_vm0, %v1249_v0 }
  0x95   :  { %929 = vmatprep.subr.bf16.mxu1 %v1249_v0  ;;  %955 = vmatprep.subr.bf16.mxu0 %v1249_v0 }
  0x97   :  { %956 = vmatpush3.bf16.msra.mxu0 %v1052_v20 }
  0x98   :  { %930 = vmatpush3.bf16.msra.mxu1 %v1037_v9  ;;  %957 = vmatprep.subr.bf16.mxu0 %v1249_v0 }
  0x99   :  { %931 = vmatprep.subr.bf16.mxu1 %v1249_v0 }
  0x9b   :  { %958 = vmatpush3.bf16.msra.mxu0 %v1054_v21  ;;  %v1065_v21 = vld [vmem:[%s1633_s12 + $0x8] sm:$0xff]  }
  0x9c   :  { %932 = vmatpush3.bf16.msra.mxu1 %v1038_v10  ;;  %959 = vmatprep.subr.bf16.mxu0 %v1249_v0 }
  0x9d   :  { %933 = vmatprep.subr.bf16.mxu1 %v1249_v0 }
  0x9f   :  { %960 = vmatpush3.bf16.msra.mxu0 %v1056_v38 }
  0xa0   :  { %934 = vmatpush3.bf16.msra.mxu1 %v1039_v11  ;;  %961 = vmatprep.subr.bf16.mxu0 %v1249_v0  ;;  %v570_v11 = vld [vmem:[#allocation7] sm:$0xff] }
  0xa1   :  { %935 = vmatprep.subr.bf16.mxu1 %v1249_v0 }
  0xa3   :  { %962 = vmatpush3.bf16.msra.mxu0 %v1058_v40 }
  0xa4   :  { %936 = vmatpush3.bf16.msra.mxu1 %v1040_v12  ;;  %987 = vmatprep.subr.bf16.mxu0 %v1249_v0 }
  0xa5   :  { %937 = vmatprep.subr.bf16.mxu1 %v1249_v0 }
  0xa8   :  { %938 = vmatpush3.bf16.msra.mxu1 %v1041_v13  ;;  %v571_v13 = vld [vmem:[#allocation7 + $0x8] sm:$0xff] }
  0xa9   :  { %939 = vmatprep.subr.bf16.mxu1 %v1249_v0 }
  0xac   :  { %940 = vmatpush3.bf16.msra.mxu1 %v1042_v14 }
  0xad   :  { %941 = vmatprep.subr.bf16.mxu1 %v1249_v0 }
  0xb0   :  { %942 = vmatpush3.bf16.msra.mxu1 %v1043_v15 }
  0xb1   :  { %967 = vmatprep.subr.bf16.mxu1 %v1249_v0 }
 0x166   :  { %v215_v23 = vpop.f32.mrb[0].mxu1 }
 0x167   :  { %v216_v24 = vadd.f32 %v812_v22, %v215_v23  ;;  %v925_v25 = vpop.f32.mrb[1].mxu1  ;;  %v1067_v23 = vld [vmem:[%s1633_s12 + $0x18] sm:$0xff]  }
 0x168   :  { %v218_v26 = vpop.f32.mrb[2].mxu1  ;;  %v1069_v25 = vld [vmem:[%s1633_s12 + $0x28] sm:$0xff]  }
 0x169   :  { %v219_v27 = vadd.f32 %v812_v22, %v218_v26  ;;  %v926_v28 = vpop.f32.mrb[3].mxu1  ;;  %v222_v29 = vmax.f32 %v216_v24, 0.0  ;;  %v1066_v22 = vld [vmem:[%s1633_s12 + $0x10] sm:$0xff]   ;;  %v1068_v24 = vld [vmem:[%s1633_s12 + $0x20] sm:$0xff]  }
 0x16a   :  { %v1070_v26 = vld [vmem:[%s1633_s12 + $0x30] sm:$0xff]  }
 0x16b   :  { %v223_v30 = vmax.f32 %v219_v27, 0.0  ;;  %v1071_v27 = vld [vmem:[%s1633_s12 + $0x38] sm:$0xff]  }
 0x16d   :  { %v224_v32 = vpack.c.bf16 %v223_v30, %v222_v29  ;;  %v845_v30 = vld [vmem:[#allocation10] ss:$0 sm:$0xff] }
 0x16f   :  { %944 = vmatmul.mubr.bf16.vlgmr.msra.gmra.mrb[4].mxu1 %v224_v32 }
 0x170   :  { %968 = vmatpush3.bf16.msra.mxu1 %v1045_v31  ;;  %983 = vmatprep.mubr.msk.bf16.mxu1 %vm1250_vm0, %v1249_v0 }
 0x171   :  { %969 = vmatprep.subr.bf16.mxu1 %v1249_v0 }
 0x174   :  { %970 = vmatpush3.bf16.msra.mxu1 %v1047_v33 }
 0x175   :  { %971 = vmatprep.subr.bf16.mxu1 %v1249_v0 }
 0x178   :  { %972 = vmatpush3.bf16.msra.mxu1 %v1049_v34 }
 0x179   :  { %973 = vmatprep.subr.bf16.mxu1 %v1249_v0 }
 0x17c   :  { %974 = vmatpush3.bf16.msra.mxu1 %v1051_v35 }
 0x17d   :  { %975 = vmatprep.subr.bf16.mxu1 %v1249_v0 }
 0x180   :  { %976 = vmatpush3.bf16.msra.mxu1 %v1053_v36 }
 0x181   :  { %977 = vmatprep.subr.bf16.mxu1 %v1249_v0 }
 0x184   :  { %978 = vmatpush3.bf16.msra.mxu1 %v1055_v37 }
 0x185   :  { %979 = vmatprep.subr.bf16.mxu1 %v1249_v0 }
 0x188   :  { %980 = vmatpush3.bf16.msra.mxu1 %v1057_v39  ;;  %v851_v39 = vld [vmem:[#allocation12] ss:$0 sm:$0xff] }
 0x189   :  { %981 = vmatprep.subr.bf16.mxu1 %v1249_v0 }
 0x18c   :  { %982 = vmatpush3.bf16.msra.mxu1 %v1059_v41 }
 0x242   :  { %v330_v43 = vpop.f32.mrb[4].mxu1 }
 0x243   :  { %v331_v44 = vadd.f32 %v818_v42, %v330_v43  ;;  %v945_v45 = vpop.f32.mrb[5].mxu1 }
 0x244   :  { %v333_v46 = vpop.f32.mrb[6].mxu1 }
 0x245   :  { %v334_v47 = vadd.f32 %v818_v42, %v333_v46  ;;  %v946_v48 = vpop.f32.mrb[7].mxu1  ;;  %v337_v49 = vmax.f32 %v331_v44, 0.0 }
 0x247   :  { %v338_v50 = vmax.f32 %v334_v47, 0.0 }
 0x249   :  { %v339_v51 = vpack.c.bf16 %v338_v50, %v337_v49 }
 0x24b   :  { %964 = vmatmul.mubr.bf16.vlgmr.msra.gmra.mrb[0].mxu0 %v339_v51  ;;  %984 = vmatmul.mubr.bf16.vlgmr.msra.gmra.mrb[8].mxu1 %v339_v51 }
 0x24c   :  { %995 = vmatprep.mubr.msk.bf16.mxu0 %vm1250_vm0, %v1249_v0  ;;  %988 = vmatpush3.bf16.msra.mxu0 %v1060_v52 }
 0x24d   :  { %989 = vmatprep.subr.bf16.mxu0 %v1249_v0 }
 0x250   :  { %990 = vmatpush3.bf16.msra.mxu0 %v1061_v53 }
 0x251   :  { %991 = vmatprep.subr.bf16.mxu0 %v1249_v0 }
 0x254   :  { %992 = vmatpush3.bf16.msra.mxu0 %v1062_v54 }
 0x255   :  { %993 = vmatprep.subr.bf16.mxu0 %v1249_v0 }
 0x258   :  { %994 = vmatpush3.bf16.msra.mxu0 %v1063_v55 }
 0x259   :  { %999 = vmatprep.subr.bf16.mxu0 %v1249_v0 }
 0x31e   :  { %v445_v58 = vpop.f32.mrb[0].mxu0  ;;  %v557_v59 = vpop.f32.mrb[8].mxu1 }
 0x31f   :  { %v446_v60 = vadd.f32 %v827_v56, %v445_v58  ;;  %v558_v61 = vadd.f32 %v836_v57, %v557_v59  ;;  %v965_v62 = vpop.f32.mrb[1].mxu0  ;;  %v985_v63 = vpop.f32.mrb[9].mxu1 }
 0x320   :  { %v448_v1 = vpop.f32.mrb[2].mxu0  ;;  %v560_v2 = vpop.f32.mrb[10].mxu1 }
 0x321   :  { %787 = vst.msk [vmem:[%s1636_s15] sm:$0xff] %vm177_vm1, %v446_v60  ;;  %v564_v3 = vmul.f32 0.5, %v558_v61  ;;  %v449_v4 = vadd.f32 %v827_v56, %v448_v1  ;;  %v561_v5 = vadd.f32 %v836_v57, %v560_v2  ;;  %v966_v6 = vpop.f32.mrb[3].mxu0  ;;  %791 = vrot.lane.b32.xlu0 %v558_v61, %s1246_s8  ;;  %v986_v7 = vpop.f32.mrb[11].mxu1 }
 0x323   :  { %v566_v8 = vmul.f32 1.442695, %v564_v3  ;;  %788 = vst.msk [vmem:[%s1636_s15 + $0x8] sm:$0xff] %vm177_vm1, %v449_v4  ;;  %v565_v9 = vmul.f32 0.5, %v561_v5 }
 0x325   :  { %1072 = vpow2.f32 %v566_v8  ;;  %v568_v10 = vmul.f32 1.442695, %v565_v9  ;;  %793 = vrot.lane.b32.xlu0 %v561_v5, %s1246_s8 }
 0x327   :  { %1074 = vpow2.f32 %v568_v10 }
 0x32f   :  { %v1073_v12 = vpop.eup %1072 }
 0x330   :  { %v572_v14 = vmul.f32 %v1073_v12, %v570_v11 }
 0x331   :  { %v1075_v15 = vpop.eup %1074 }
 0x332   :  { %v573_v16 = vmul.f32 %v1075_v15, %v571_v13  ;;  %v574_v17 = vadd.f32 %v572_v14, %v446_v60 }
 0x334   :  { %v575_v18 = vadd.f32 %v573_v16, %v449_v4 }
 0x336   :  { %v576_v20 = vpack.c.bf16 %v575_v18, %v574_v17 }
 0x338   :  { %996 = vmatmul.mubr.msk.bf16.vlgmr.msra.gmra.mrb[4].mxu0 %vm177_vm1, %v576_v20 }
 0x339   :  { %1000 = vmatpush3.bf16.msra.mxu0 %v1064_v19  ;;  %1015 = vmatprep.mubr.msk.bf16.mxu0 %vm1250_vm0, %v1249_v0 }
 0x33a   :  { %1001 = vmatprep.subr.bf16.mxu0 %v1249_v0 }
 0x33d   :  { %1002 = vmatpush3.bf16.msra.mxu0 %v1065_v21 }
 0x33e   :  { %1003 = vmatprep.subr.bf16.mxu0 %v1249_v0 }
 0x341   :  { %1004 = vmatpush3.bf16.msra.mxu0 %v1066_v22 }
 0x342   :  { %1005 = vmatprep.subr.bf16.mxu0 %v1249_v0 }
 0x345   :  { %1006 = vmatpush3.bf16.msra.mxu0 %v1067_v23 }
 0x346   :  { %1007 = vmatprep.subr.bf16.mxu0 %v1249_v0 }
 0x349   :  { %1008 = vmatpush3.bf16.msra.mxu0 %v1068_v24 }
 0x34a   :  { %1009 = vmatprep.subr.bf16.mxu0 %v1249_v0 }
 0x34d   :  { %1010 = vmatpush3.bf16.msra.mxu0 %v1069_v25 }
 0x34e   :  { %1011 = vmatprep.subr.bf16.mxu0 %v1249_v0 }
 0x351   :  { %1012 = vmatpush3.bf16.msra.mxu0 %v1070_v26 }
 0x352   :  { %1013 = vmatprep.subr.bf16.mxu0 %v1249_v0 }
 0x355   :  { %1014 = vmatpush3.bf16.msra.mxu0 %v1071_v27 }
 0x393   :  { %v792_v28 = vpop.permute.xlu0 %791 }
 0x394   :  { %798 = vst.msk [vmem:[%s1636_s15] sm:$0xff] %vm797_vm2, %v792_v28 }
 0x397   :  { %v794_v29 = vpop.permute.xlu0 %793 }
 0x398   :  { %799 = vst.msk [vmem:[%s1636_s15 + $0x8] sm:$0xff] %vm797_vm2, %v794_v29 }
 0x40b   :  { %v653_v31 = vpop.f32.mrb[4].mxu0 }
 0x40c   :  { %v654_v32 = vadd.f32 %v845_v30, %v653_v31  ;;  %v997_v0 = vpop.f32.mrb[5].mxu0 }
 0x40d   :  { %v656_v33 = vpop.f32.mrb[6].mxu0 }
 0x40e   :  { %v657_v34 = vadd.f32 %v845_v30, %v656_v33  ;;  %v998_v35 = vpop.f32.mrb[7].mxu0  ;;  %v660_v36 = vmax.f32 %v654_v32, 0.0 }
 0x410   :  { %v661_v37 = vmax.f32 %v657_v34, 0.0 }
 0x412   :  { %v662_v38 = vpack.c.bf16 %v661_v37, %v660_v36 }
 0x414   :  { %1016 = vmatmul.mubr.bf16.vlgmr.msra.gmra.mrb[8].mxu0 %v662_v38 }
 0x4e7   :  { %v768_v40 = vpop.f32.mrb[8].mxu0 }
 0x4e8   :  { %v769_v41 = vadd.f32 %v851_v39, %v768_v40  ;;  %v1017_v42 = vpop.f32.mrb[9].mxu0 }
 0x4e9   :  { %v771_v43 = vpop.f32.mrb[10].mxu0 }
 0x4ea   :  { %v772_v44 = vadd.f32 %v851_v39, %v771_v43  ;;  %v1018_v45 = vpop.f32.mrb[11].mxu0  ;;  %v775_v46 = vmax.f32 %v769_v41, 0.0 }
 0x4ec   :  { %v776_v47 = vmax.f32 %v772_v44, 0.0 }
 0x4ee   :  { %v867_v48 = vpack.c.bf16 %v776_v47, %v775_v46 }
 0x4f0   :  { %868 = vst [vmem:[%s1635_s14] sm:$0xff] %v867_v48  }
 0x4f1   :  { %808 = vsyncpa [#allocation3], 1 }
 0x4f2   :  { %809 = vsyncpa [#allocation5], 1 }
 0x4f3   :  { %810 = vsyncpa [#allocation8], 1 }
 0x4f4   :  { %811 = vsyncpa [#allocation11], 1 }

</bundles_post_ra>
